<compile_context>
chip_gen: v6e
topology: v6e:2x2x1
jax: 0.10.0
libtpu: 0.0.40
codegen_flags: <defaults>
</compile_context>

<pallas_src>
import functools
import math

import jax
import jax.numpy as jnp
from jax.experimental import pallas as pl
from jax.experimental.pallas import tpu as pltpu

# ----------------------------- model config (small) -------------------------
BATCH = 2
IMG_HW = 16
CTX_DIM = 8
STEM_C = 8
HEAD_C = 32          # stand-in for the 1280-dim feature head (scaled down)
NUM_CLASSES = 16     # module default is 1000; scaled down
BLOCK_CFG = [
    dict(cin=STEM_C, cout=16, expand=1),   # MBConv expand_ratio=1
    dict(cin=16,     cout=16, expand=4),   # MBConv expand_ratio=4, identity skip
]
BN_EPS = 1e-3

C_PAD = 128          # lane-dense padded channel width (all activations)
STEM_K_PAD = 128     # padded im2col depth for the stem (k*k*3 = 27 -> 128)
MM_DTYPE = jnp.bfloat16   # matmul operand dtype (f32 accumulation + epilogue)


def _swish(v):
    return v * jax.nn.sigmoid(v)


# ----------------------------- Pallas kernels -------------------------------
def _mm_affine_act_kernel(x_ref, w_ref, ss_ref, o_ref, *, act):
    # y = act((x @ w) * scale + shift); scale/shift packed as ss[0], ss[1].
    acc = jnp.dot(x_ref[...], w_ref[...], preferred_element_type=jnp.float32)
    ss = ss_ref[...]
    y = acc * ss[0:1, :] + ss[1:2, :]
    if act == "swish":
        y = y * jax.nn.sigmoid(y)
    o_ref[...] = y.astype(o_ref.dtype)


def pallas_matmul_affine_act(x, w, ss, act="none", tm=64):
    """Tiled-over-M matmul + folded-BN affine + optional swish.

    x: [M, K] (bf16), w: [K, N] (bf16), ss: [2, N] (f32, scale/shift packed).
    N and K are pre-padded lane-dense (128 multiples) by the caller.
    """
    M, K = x.shape
    Kw, N = w.shape
    assert K == Kw and ss.shape == (2, N)
    Mp = ((M + tm - 1) // tm) * tm
    if Mp != M:
        x = jnp.pad(x, ((0, Mp - M), (0, 0)))
    out = pl.pallas_call(
        functools.partial(_mm_affine_act_kernel, act=act),
        out_shape=jax.ShapeDtypeStruct((Mp, N), jnp.float32),
        grid=(Mp // tm,),
        in_specs=[
            pl.BlockSpec((tm, K), lambda i: (i, 0)),
            pl.BlockSpec((K, N), lambda i: (0, 0)),
            pl.BlockSpec((2, N), lambda i: (0, 0)),
        ],
        out_specs=pl.BlockSpec((tm, N), lambda i: (i, 0)),
        compiler_params=pltpu.CompilerParams(
            dimension_semantics=("parallel",)),
    )(x, w, ss)
    return out[:M]


def _film_block_kernel(v_ref, gb_ref, *rest, has_skip):
    # Fused MBConv-with-zeroed-depthwise block:
    #   out = (1 + gamma) * (proj_const + residual) + beta
    # v_ref: (1, 1, C) constant-folded expand->dw->SE->project output.
    # gb_ref: (1, 2, C) per-batch FiLM gamma (row 0) / beta (row 1).
    v = v_ref[...]                       # (1, 1, C)
    gb = gb_ref[...]                     # (1, 2, C)
    gamma = gb[:, 0:1, :]
    beta = gb[:, 1:2, :]
    if has_skip:
        res_ref, o_ref = rest
        y = res_ref[...] + v             # (1, HW, C)
        o_ref[...] = ((1.0 + gamma) * y + beta).astype(o_ref.dtype)
    else:
        (o_ref,) = rest
        out = (1.0 + gamma) * v + beta   # (1, 1, C), constant over HW
        o_ref[...] = jnp.broadcast_to(out, o_ref.shape).astype(o_ref.dtype)


def pallas_film_block(v, gb, res, B, HW, C, has_skip):
    in_specs = [
        pl.BlockSpec((1, 1, C), lambda b: (0, 0, 0)),
        pl.BlockSpec((1, 2, C), lambda b: (b, 0, 0)),
    ]
    args = [v, gb]
    if has_skip:
        in_specs.append(pl.BlockSpec((1, HW, C), lambda b: (b, 0, 0)))
        args.append(res)
    return pl.pallas_call(
        functools.partial(_film_block_kernel, has_skip=has_skip),
        out_shape=jax.ShapeDtypeStruct((B, HW, C), jnp.float32),
        grid=(B,),
        in_specs=in_specs,
        out_specs=pl.BlockSpec((1, HW, C), lambda b: (b, 0, 0)),
        compiler_params=pltpu.CompilerParams(
            dimension_semantics=("parallel",)),
    )(*args)


def _head_pool_fc_kernel(h_ref, hw_ref, hss_ref, fcw_ref, fcb_ref, o_ref):
    # Fused: head 1x1 conv + BN + swish -> global average pool -> classifier.
    x = h_ref[0].astype(MM_DTYPE)                              # (HW, Cin)
    y = jnp.dot(x, hw_ref[...], preferred_element_type=jnp.float32)
    ss = hss_ref[...]
    y = y * ss[0:1, :] + ss[1:2, :]
    y = y * jax.nn.sigmoid(y)                                  # (HW, Ch)
    pooled = jnp.mean(y, axis=0, keepdims=True)                # (1, Ch)
    logits = jnp.dot(pooled.astype(MM_DTYPE), fcw_ref[...],
                     preferred_element_type=jnp.float32) + fcb_ref[...]
    o_ref[...] = logits[None].astype(o_ref.dtype)              # (1, 1, Ncls)


def pallas_head_pool_fc(h, head_w, head_ss, fc_w, fc_b):
    B, HW, Cin = h.shape
    Ch = head_w.shape[1]
    Ncls = fc_w.shape[1]
    out = pl.pallas_call(
        _head_pool_fc_kernel,
        out_shape=jax.ShapeDtypeStruct((B, 1, Ncls), jnp.float32),
        grid=(B,),
        in_specs=[
            pl.BlockSpec((1, HW, Cin), lambda b: (b, 0, 0)),
            pl.BlockSpec((Cin, Ch), lambda b: (0, 0)),
            pl.BlockSpec((2, Ch), lambda b: (0, 0)),
            pl.BlockSpec((Ch, Ncls), lambda b: (0, 0)),
            pl.BlockSpec((1, Ncls), lambda b: (0, 0)),
        ],
        out_specs=pl.BlockSpec((1, 1, Ncls), lambda b: (b, 0, 0)),
        compiler_params=pltpu.CompilerParams(
            dimension_semantics=("parallel",)),
    )(h, head_w, head_ss, fc_w, fc_b)
    return out[:, 0, :]


# ----------------------------- JAX glue (im2col) ----------------------------
def im2col(x, k, stride, pad):
    # x: [B, H, W, C] -> patches [B*Ho*Wo, k*k*C]
    B, H, W, C = x.shape
    xp = jnp.pad(x, ((0, 0), (pad, pad), (pad, pad), (0, 0)))
    Ho = (H + 2 * pad - k) // stride + 1
    Wo = (W + 2 * pad - k) // stride + 1
    cols = []
    for di in range(k):
        for dj in range(k):
            cols.append(xp[:, di:di + stride * Ho:stride, dj:dj + stride * Wo:stride, :])
    patches = jnp.concatenate(cols, axis=-1)
    return patches.reshape(B * Ho * Wo, k * k * C), Ho, Wo


def pad_last(x, n):
    return jnp.pad(x, [(0, 0)] * (x.ndim - 1) + [(0, n - x.shape[-1])])


# ----------------------------- parameter init -------------------------------
def _conv_weight_mat(key, cout, cin, k, rows_pad, cols_pad, dtype=jnp.float32):
    # Torch layout [cout, cin, k, k] -> im2col layout [k*k*cin, cout], zero-padded.
    w = jax.random.normal(key, (cout, cin, k, k), jnp.float32) / math.sqrt(cin * k * k)
    wm = jnp.transpose(w, (2, 3, 1, 0)).reshape(k * k * cin, cout)
    wm = jnp.pad(wm, ((0, rows_pad - k * k * cin), (0, cols_pad - cout)))
    return wm.astype(dtype)


def _bn_fold(key, c, n_pad=None):
    # Folded BN (running_mean=0, running_var=1 — fresh stats), packed (2, c):
    # row 0 = scale, row 1 = shift.
    kg, kb = jax.random.split(key)
    gamma = 1.0 + 0.1 * jax.random.normal(kg, (1, c), jnp.float32)
    beta = 0.1 * jax.random.normal(kb, (1, c), jnp.float32)
    scale = gamma / jnp.sqrt(1.0 + BN_EPS)
    shift = beta
    ss = jnp.concatenate([scale, shift], axis=0)
    if n_pad is not None:
        ss = jnp.pad(ss, ((0, 0), (0, n_pad - c)))
    return ss


def _linear(key, cin, cout, scale=1.0, rows_pad=None, cols_pad=None,
            w_dtype=jnp.float32):
    kw, kb = jax.random.split(key)
    w = scale * jax.random.normal(kw, (cin, cout), jnp.float32) / math.sqrt(cin)
    b = scale * 0.1 * jax.random.normal(kb, (1, cout), jnp.float32)
    if rows_pad is not None:
        w = jnp.pad(w, ((0, rows_pad - cin), (0, 0)))
    if cols_pad is not None:
        w = jnp.pad(w, ((0, 0), (0, cols_pad - cout)))
        b = jnp.pad(b, ((0, 0), (0, cols_pad - cout)))
    return w.astype(w_dtype), b


def init_params(key):
    keys = iter(jax.random.split(key, 128))
    p = {}
    p["stem_w"] = _conv_weight_mat(next(keys), STEM_C, 3, 3,
                                   rows_pad=STEM_K_PAD, cols_pad=C_PAD,
                                   dtype=MM_DTYPE)
    p["stem_ss"] = _bn_fold(next(keys), STEM_C, n_pad=C_PAD)

    blocks = []
    for cfg in BLOCK_CFG:
        cin, cout, e = cfg["cin"], cfg["cout"], cfg["expand"]
        cexp = cin * e
        b = {"skip": (cin == cout)}
        if e != 1:
            # Unused in the forward pass: the expand conv's output is consumed
            # only by the zeroed depthwise conv (FiLMBlock init). Kept for
            # structural fidelity with the PyTorch module's parameterization.
            b["expand_w"] = _conv_weight_mat(next(keys), cexp, cin, 1,
                                             rows_pad=cin, cols_pad=cexp)
            b["expand_ss"] = _bn_fold(next(keys), cexp)
        # FiLMBlock.__init__ zeroes the depthwise conv weights -> the depthwise
        # stage output is swish(dw_shift), a per-channel constant.
        b["dw_ss"] = _bn_fold(next(keys), cexp)                    # (2, cexp)
        cse = max(1, int(cin * 0.25))
        b["se_w1"], b["se_b1"] = _linear(next(keys), cexp, cse)
        b["se_w2"], b["se_b2"] = _linear(next(keys), cse, cexp)
        b["proj_w"] = _conv_weight_mat(next(keys), cout, cexp, 1,
                                       rows_pad=cexp, cols_pad=C_PAD)
        b["proj_ss"] = _bn_fold(next(keys), cout, n_pad=C_PAD)
        # FiLM gamma/beta Linear(context), packed into one (CTX, 2, C_PAD) weight.
        wg, bg = _linear(next(keys), CTX_DIM, cout, scale=0.1)
        wb, bb = _linear(next(keys), CTX_DIM, cout, scale=0.1)
        film_w = jnp.stack([wg, wb], axis=1)                       # (CTX, 2, cout)
        film_b = jnp.concatenate([bg, bb], axis=0)                 # (2, cout)
        b["film_w"] = jnp.pad(film_w, ((0, 0), (0, 0), (0, C_PAD - cout)))
        b["film_b"] = jnp.pad(film_b, ((0, 0), (0, C_PAD - cout)))
        blocks.append(b)
    p["blocks"] = blocks

    p["head_w"] = _conv_weight_mat(next(keys), HEAD_C, BLOCK_CFG[-1]["cout"], 1,
                                   rows_pad=C_PAD, cols_pad=C_PAD, dtype=MM_DTYPE)
    p["head_ss"] = _bn_fold(next(keys), HEAD_C, n_pad=C_PAD)
    p["fc_w"], p["fc_b"] = _linear(next(keys), HEAD_C, NUM_CLASSES,
                                   rows_pad=C_PAD, cols_pad=C_PAD,
                                   w_dtype=MM_DTYPE)
    return p


# ----------------------------- forward pass ---------------------------------
def film_efficientnet_forward(x_nchw, context, params):
    x = jnp.transpose(x_nchw, (0, 2, 3, 1)).astype(jnp.float32)   # NCHW -> NHWC
    B = x.shape[0]

    # stem conv 3x3 stride 2 + BN + swish (im2col matmul, lane-padded, M-tiled)
    patches, Ho, Wo = im2col(x, k=3, stride=2, pad=1)             # [M, 27]
    patches = pad_last(patches, STEM_K_PAD).astype(MM_DTYPE)      # [M, 128]
    h = pallas_matmul_affine_act(patches, params["stem_w"], params["stem_ss"],
                                 act="swish")
    HW = Ho * Wo
    h = h.reshape(B, HW, C_PAD)

    for blk in params["blocks"]:
        # Constant fold (review item 1): depthwise weights are zero, so
        # expand->depthwise->SE->project collapses to a per-channel constant.
        # These are a handful of tiny vector ops on (1, C) data; plain JAX.
        dw_act = _swish(blk["dw_ss"][1:2, :])                            # (1, cexp)
        s = _swish(dw_act @ blk["se_w1"] + blk["se_b1"])                 # (1, cse)
        g = jax.nn.sigmoid(s @ blk["se_w2"] + blk["se_b2"])              # (1, cexp)
        v = (dw_act * g) @ blk["proj_w"]                                 # (1, C_PAD)
        v = v * blk["proj_ss"][0:1, :] + blk["proj_ss"][1:2, :]
        v = v[:, None, :]                                                # (1,1,C_PAD)

        # Single fused (CTX -> 2*C) FiLM projection (review item 3).
        gb = jnp.einsum("bk,kgc->bgc", context, blk["film_w"]) + blk["film_b"][None]

        # One fused Pallas kernel per block: residual add + FiLM (review item 2).
        h = pallas_film_block(v, gb, h if blk["skip"] else None,
                              B, HW, C_PAD, has_skip=blk["skip"])

    # head 1x1 conv + BN + swish + adaptive avg pool + classifier, fused.
    logits_pad = pallas_head_pool_fc(h, params["head_w"], params["head_ss"],
                                     params["fc_w"], params["fc_b"])
    return logits_pad[:, :NUM_CLASSES]


# ----------------------------- main ------------------------------------------
if __name__ == "__main__":
    key = jax.random.PRNGKey(0)
    kx, kc, kp = jax.random.split(key, 3)
    x = jax.random.normal(kx, (BATCH, 3, IMG_HW, IMG_HW), jnp.float32)   # NCHW
    context = jax.random.normal(kc, (BATCH, CTX_DIM), jnp.float32)
    params = init_params(kp)

    fwd = jax.jit(lambda xi, ci: film_efficientnet_forward(xi, ci, params))
    logits = jax.block_until_ready(fwd(x, context))
    assert logits.shape == (BATCH, NUM_CLASSES)
    assert bool(jnp.all(jnp.isfinite(logits)))
    print("KERNEL_OK")
</pallas_src>

<mosaic_0001>
module attributes {stable_mosaic.version = 11 : i64} {
  func.func @_film_block_kernel(%arg0: i32, %arg1: memref<1x1x128xf32, #tpu.memory_space<vmem>>, %arg2: memref<1x2x128xf32, #tpu.memory_space<vmem>>, %arg3: memref<1x64x128xf32, #tpu.memory_space<vmem>>, %arg4: memref<1x64x128xf32, #tpu.memory_space<vmem>>) attributes {dimension_semantics = [#tpu.dimension_semantics<parallel>], iteration_bounds = array<i64: 2>, scalar_prefetch = 0 : i64, scratch_operands = 0 : i64, tpu.core_type = #tpu.core_type<tc>, window_params = [{pipeline_mode = #tpu.pipeline_mode<synchronous>, transform_indices = @transform_0, window_bounds = array<i64: 1, 1, 128>}, {transform_indices = @transform_1, window_bounds = array<i64: 1, 2, 128>}, {transform_indices = @transform_2, window_bounds = array<i64: 1, 64, 128>}, {transform_indices = @transform_3, window_bounds = array<i64: 1, 64, 128>}]} {
    %c0 = arith.constant 0 : index
    %c0_0 = arith.constant 0 : index
    %c0_1 = arith.constant 0 : index
    %0 = vector.load %arg1[%c0, %c0_0, %c0_1] : memref<1x1x128xf32, #tpu.memory_space<vmem>>, vector<1x1x128xf32>
    %c0_2 = arith.constant 0 : index
    %c0_3 = arith.constant 0 : index
    %c0_4 = arith.constant 0 : index
    %1 = vector.load %arg2[%c0_2, %c0_3, %c0_4] : memref<1x2x128xf32, #tpu.memory_space<vmem>>, vector<1x2x128xf32>
    %2 = vector.extract_strided_slice %1 {offsets = [0, 0, 0], sizes = [1, 1, 128], strides = [1, 1, 1]} : vector<1x2x128xf32> to vector<1x1x128xf32>
    %3 = vector.extract_strided_slice %1 {offsets = [0, 1, 0], sizes = [1, 1, 128], strides = [1, 1, 1]} : vector<1x2x128xf32> to vector<1x1x128xf32>
    %c0_5 = arith.constant 0 : index
    %c0_6 = arith.constant 0 : index
    %c0_7 = arith.constant 0 : index
    %4 = vector.load %arg3[%c0_5, %c0_6, %c0_7] : memref<1x64x128xf32, #tpu.memory_space<vmem>>, vector<1x64x128xf32>
    %5 = vector.broadcast %0 : vector<1x1x128xf32> to vector<1x64x128xf32>
    %6 = arith.addf %4, %5 : vector<1x64x128xf32>
    %cst = arith.constant 1.000000e+00 : f32
    %7 = vector.broadcast %cst : f32 to vector<1x1x128xf32>
    %8 = arith.addf %7, %2 : vector<1x1x128xf32>
    %9 = vector.broadcast %8 : vector<1x1x128xf32> to vector<1x64x128xf32>
    %10 = arith.mulf %9, %6 : vector<1x64x128xf32>
    %11 = vector.broadcast %3 : vector<1x1x128xf32> to vector<1x64x128xf32>
    %12 = arith.addf %10, %11 : vector<1x64x128xf32>
    %c0_8 = arith.constant 0 : index
    %c0_9 = arith.constant 0 : index
    %c0_10 = arith.constant 0 : index
    %13 = vector.load %arg4[%c0_8, %c0_9, %c0_10] : memref<1x64x128xf32, #tpu.memory_space<vmem>>, vector<1x64x128xf32>
    tpu.vector_store %arg4[%c0_8, %c0_9, %c0_10], %12 {strides = array<i32>} : memref<1x64x128xf32, #tpu.memory_space<vmem>>, vector<1x64x128xf32>,
    return
  }
  func.func @transform_0(%arg0: i32) -> (i32, i32, i32) {
    %c0_i32 = arith.constant 0 : i32
    %c0_i32_0 = arith.constant 0 : i32
    %c0_i32_1 = arith.constant 0 : i32
    %c0_i32_2 = arith.constant 0 : i32
    return %c0_i32, %c0_i32_0, %c0_i32_1 : i32, i32, i32
  }
  func.func @transform_1(%arg0: i32) -> (i32, i32, i32) {
    %c0_i32 = arith.constant 0 : i32
    %c0_i32_0 = arith.constant 0 : i32
    %c0_i32_1 = arith.constant 0 : i32
    return %arg0, %c0_i32, %c0_i32_0 : i32, i32, i32
  }
  func.func @transform_2(%arg0: i32) -> (i32, i32, i32) {
    %c0_i32 = arith.constant 0 : i32
    %c0_i32_0 = arith.constant 0 : i32
    %c0_i32_1 = arith.constant 0 : i32
    return %arg0, %c0_i32, %c0_i32_0 : i32, i32, i32
  }
  func.func @transform_3(%arg0: i32) -> (i32, i32, i32) {
    %c0_i32 = arith.constant 0 : i32
    %c0_i32_0 = arith.constant 0 : i32
    %c0_i32_1 = arith.constant 0 : i32
    return %arg0, %c0_i32, %c0_i32_0 : i32, i32, i32
  }
}

module attributes {stable_mosaic.version = 11 : i64} {
  func.func @_film_block_kernel(%arg0: i32, %arg1: memref<1x1x128xf32, #tpu.memory_space<vmem>>, %arg2: memref<1x2x128xf32, #tpu.memory_space<vmem>>, %arg3: memref<1x64x128xf32, #tpu.memory_space<vmem>>) attributes {dimension_semantics = [#tpu.dimension_semantics<parallel>], iteration_bounds = array<i64: 2>, scalar_prefetch = 0 : i64, scratch_operands = 0 : i64, tpu.core_type = #tpu.core_type<tc>, window_params = [{pipeline_mode = #tpu.pipeline_mode<synchronous>, transform_indices = @transform_0, window_bounds = array<i64: 1, 1, 128>}, {transform_indices = @transform_1, window_bounds = array<i64: 1, 2, 128>}, {transform_indices = @transform_2, window_bounds = array<i64: 1, 64, 128>}]} {
    %c0 = arith.constant 0 : index
    %c0_0 = arith.constant 0 : index
    %c0_1 = arith.constant 0 : index
    %0 = vector.load %arg1[%c0, %c0_0, %c0_1] : memref<1x1x128xf32, #tpu.memory_space<vmem>>, vector<1x1x128xf32>
    %c0_2 = arith.constant 0 : index
    %c0_3 = arith.constant 0 : index
    %c0_4 = arith.constant 0 : index
    %1 = vector.load %arg2[%c0_2, %c0_3, %c0_4] : memref<1x2x128xf32, #tpu.memory_space<vmem>>, vector<1x2x128xf32>
    %2 = vector.extract_strided_slice %1 {offsets = [0, 0, 0], sizes = [1, 1, 128], strides = [1, 1, 1]} : vector<1x2x128xf32> to vector<1x1x128xf32>
    %3 = vector.extract_strided_slice %1 {offsets = [0, 1, 0], sizes = [1, 1, 128], strides = [1, 1, 1]} : vector<1x2x128xf32> to vector<1x1x128xf32>
    %cst = arith.constant 1.000000e+00 : f32
    %4 = vector.broadcast %cst : f32 to vector<1x1x128xf32>
    %5 = arith.addf %4, %2 : vector<1x1x128xf32>
    %6 = arith.mulf %5, %0 : vector<1x1x128xf32>
    %7 = arith.addf %6, %3 : vector<1x1x128xf32>
    %8 = vector.shape_cast %7 : vector<1x1x128xf32> to vector<1x1x128xf32>
    %9 = vector.broadcast %8 : vector<1x1x128xf32> to vector<1x64x128xf32>
    %c0_5 = arith.constant 0 : index
    %c0_6 = arith.constant 0 : index
    %c0_7 = arith.constant 0 : index
    %10 = vector.load %arg3[%c0_5, %c0_6, %c0_7] : memref<1x64x128xf32, #tpu.memory_space<vmem>>, vector<1x64x128xf32>
    tpu.vector_store %arg3[%c0_5, %c0_6, %c0_7], %9 {strides = array<i32>} : memref<1x64x128xf32, #tpu.memory_space<vmem>>, vector<1x64x128xf32>,
    return
  }
  func.func @transform_0(%arg0: i32) -> (i32, i32, i32) {
    %c0_i32 = arith.constant 0 : i32
    %c0_i32_0 = arith.constant 0 : i32
    %c0_i32_1 = arith.constant 0 : i32
    %c0_i32_2 = arith.constant 0 : i32
    return %c0_i32, %c0_i32_0, %c0_i32_1 : i32, i32, i32
  }
  func.func @transform_1(%arg0: i32) -> (i32, i32, i32) {
    %c0_i32 = arith.constant 0 : i32
    %c0_i32_0 = arith.constant 0 : i32
    %c0_i32_1 = arith.constant 0 : i32
    return %arg0, %c0_i32, %c0_i32_0 : i32, i32, i32
  }
  func.func @transform_2(%arg0: i32) -> (i32, i32, i32) {
    %c0_i32 = arith.constant 0 : i32
    %c0_i32_0 = arith.constant 0 : i32
    %c0_i32_1 = arith.constant 0 : i32
    return %arg0, %c0_i32, %c0_i32_0 : i32, i32, i32
  }
}

module attributes {stable_mosaic.version = 11 : i64} {
  func.func @_head_pool_fc_kernel(%arg0: i32, %arg1: memref<1x64x128xf32, #tpu.memory_space<vmem>>, %arg2: memref<128x128xbf16, #tpu.memory_space<vmem>>, %arg3: memref<2x128xf32, #tpu.memory_space<vmem>>, %arg4: memref<128x128xbf16, #tpu.memory_space<vmem>>, %arg5: memref<1x128xf32, #tpu.memory_space<vmem>>, %arg6: memref<1x1x128xf32, #tpu.memory_space<vmem>>) attributes {dimension_semantics = [#tpu.dimension_semantics<parallel>], iteration_bounds = array<i64: 2>, scalar_prefetch = 0 : i64, scratch_operands = 0 : i64, tpu.core_type = #tpu.core_type<tc>, window_params = [{transform_indices = @transform_0, window_bounds = array<i64: 1, 64, 128>}, {pipeline_mode = #tpu.pipeline_mode<synchronous>, transform_indices = @transform_1, window_bounds = array<i64: 128, 128>}, {pipeline_mode = #tpu.pipeline_mode<synchronous>, transform_indices = @transform_2, window_bounds = array<i64: 2, 128>}, {pipeline_mode = #tpu.pipeline_mode<synchronous>, transform_indices = @transform_3, window_bounds = array<i64: 128, 128>}, {pipeline_mode = #tpu.pipeline_mode<synchronous>, transform_indices = @transform_4, window_bounds = array<i64: 1, 128>}, {transform_indices = @transform_5, window_bounds = array<i64: 1, 1, 128>}]} {
    %c0 = arith.constant 0 : index
    %c0_0 = arith.constant 0 : index
    %c0_1 = arith.constant 0 : index
    %0 = vector.load %arg1[%c0, %c0_0, %c0_1] : memref<1x64x128xf32, #tpu.memory_space<vmem>>, vector<1x64x128xf32>
    %1 = vector.shape_cast %0 : vector<1x64x128xf32> to vector<64x128xf32>
    %2 = arith.truncf %1 : vector<64x128xf32> to vector<64x128xbf16>
    %c0_2 = arith.constant 0 : index
    %c0_3 = arith.constant 0 : index
    %3 = vector.load %arg2[%c0_2, %c0_3] : memref<128x128xbf16, #tpu.memory_space<vmem>>, vector<128x128xbf16>
    %cst = arith.constant dense<0.000000e+00> : vector<64x128xf32>
    %4 = tpu.matmul %2, %3, %cst {dimension_numbers = #tpu.dot_dimension_numbers<[1], [0], [0], [1], [0, 0, 1, 1], [], []>} : vector<64x128xbf16>, vector<128x128xbf16>, vector<64x128xf32> -> vector<64x128xf32>
    %c0_4 = arith.constant 0 : index
    %c0_5 = arith.constant 0 : index
    %5 = vector.load %arg3[%c0_4, %c0_5] : memref<2x128xf32, #tpu.memory_space<vmem>>, vector<2x128xf32>
    %6 = vector.extract_strided_slice %5 {offsets = [0, 0], sizes = [1, 128], strides = [1, 1]} : vector<2x128xf32> to vector<1x128xf32>
    %7 = vector.broadcast %6 : vector<1x128xf32> to vector<64x128xf32>
    %8 = arith.mulf %4, %7 : vector<64x128xf32>
    %9 = vector.extract_strided_slice %5 {offsets = [1, 0], sizes = [1, 128], strides = [1, 1]} : vector<2x128xf32> to vector<1x128xf32>
    %10 = vector.broadcast %9 : vector<1x128xf32> to vector<64x128xf32>
    %11 = arith.addf %8, %10 : vector<64x128xf32>
    %12 = arith.negf %11 : vector<64x128xf32>
    %13 = math.exp %12 : vector<64x128xf32>
    %cst_6 = arith.constant 1.000000e+00 : f32
    %14 = vector.broadcast %cst_6 : f32 to vector<64x128xf32>
    %15 = arith.addf %14, %13 : vector<64x128xf32>
    %16 = arith.divf %14, %15 : vector<64x128xf32>
    %17 = arith.mulf %11, %16 : vector<64x128xf32>
    %cst_7 = arith.constant dense<0.000000e+00> : vector<128xf32>
    %18 = vector.multi_reduction <add>, %17, %cst_7 [0] : vector<64x128xf32> to vector<128xf32>
    %19 = vector.shape_cast %18 : vector<128xf32> to vector<1x128xf32>
    %cst_8 = arith.constant 6.400000e+01 : f32
    %20 = vector.broadcast %cst_8 : f32 to vector<1x128xf32>
    %21 = arith.divf %19, %20 : vector<1x128xf32>
    %22 = arith.truncf %21 : vector<1x128xf32> to vector<1x128xbf16>
    %c0_9 = arith.constant 0 : index
    %c0_10 = arith.constant 0 : index
    %23 = vector.load %arg4[%c0_9, %c0_10] : memref<128x128xbf16, #tpu.memory_space<vmem>>, vector<128x128xbf16>
    %cst_11 = arith.constant dense<0.000000e+00> : vector<1x128xf32>
    %24 = tpu.matmul %22, %23, %cst_11 {dimension_numbers = #tpu.dot_dimension_numbers<[1], [0], [0], [1], [0, 0, 1, 1], [], []>} : vector<1x128xbf16>, vector<128x128xbf16>, vector<1x128xf32> -> vector<1x128xf32>
    %c0_12 = arith.constant 0 : index
    %c0_13 = arith.constant 0 : index
    %25 = vector.load %arg5[%c0_12, %c0_13] : memref<1x128xf32, #tpu.memory_space<vmem>>, vector<1x128xf32>
    %26 = arith.addf %24, %25 : vector<1x128xf32>
    %27 = vector.shape_cast %26 : vector<1x128xf32> to vector<1x1x128xf32>
    %c0_14 = arith.constant 0 : index
    %c0_15 = arith.constant 0 : index
    %c0_16 = arith.constant 0 : index
    %28 = vector.load %arg6[%c0_14, %c0_15, %c0_16] : memref<1x1x128xf32, #tpu.memory_space<vmem>>, vector<1x1x128xf32>
    tpu.vector_store %arg6[%c0_14, %c0_15, %c0_16], %27 {strides = array<i32>} : memref<1x1x128xf32, #tpu.memory_space<vmem>>, vector<1x1x128xf32>,
    return
  }
  func.func @transform_0(%arg0: i32) -> (i32, i32, i32) {
    %c0_i32 = arith.constant 0 : i32
    %c0_i32_0 = arith.constant 0 : i32
    %c0_i32_1 = arith.constant 0 : i32
    return %arg0, %c0_i32, %c0_i32_0 : i32, i32, i32
  }
  func.func @transform_1(%arg0: i32) -> (i32, i32) {
    %c0_i32 = arith.constant 0 : i32
    %c0_i32_0 = arith.constant 0 : i32
    %c0_i32_1 = arith.constant 0 : i32
    return %c0_i32, %c0_i32_0 : i32, i32
  }
  func.func @transform_2(%arg0: i32) -> (i32, i32) {
    %c0_i32 = arith.constant 0 : i32
    %c0_i32_0 = arith.constant 0 : i32
    %c0_i32_1 = arith.constant 0 : i32
    return %c0_i32, %c0_i32_0 : i32, i32
  }
  func.func @transform_3(%arg0: i32) -> (i32, i32) {
    %c0_i32 = arith.constant 0 : i32
    %c0_i32_0 = arith.constant 0 : i32
    %c0_i32_1 = arith.constant 0 : i32
    return %c0_i32, %c0_i32_0 : i32, i32
  }
  func.func @transform_4(%arg0: i32) -> (i32, i32) {
    %c0_i32 = arith.constant 0 : i32
    %c0_i32_0 = arith.constant 0 : i32
    %c0_i32_1 = arith.constant 0 : i32
    return %c0_i32, %c0_i32_0 : i32, i32
  }
  func.func @transform_5(%arg0: i32) -> (i32, i32, i32) {
    %c0_i32 = arith.constant 0 : i32
    %c0_i32_0 = arith.constant 0 : i32
    %c0_i32_1 = arith.constant 0 : i32
    return %arg0, %c0_i32, %c0_i32_0 : i32, i32, i32
  }
}

</mosaic_0001>

<bundles_post_ra>
// kernel: _lambda_.4
= control target key start
LH: loop header
LB: loop body
LE: loop exit
PB: predicated region body
PF: predicated region fallthrough
CT: control target
= control target key end

     0   :  { %s363_s12 = smov 0   ;;  %s394_s0 = inlined_call_operand.vmem [shape: f32[1,1,128], index: 0, kind: input, shape index: {}]   ;;  %s395_s1 = inlined_call_operand.vmem [shape: f32[2,2,128], index: 1, kind: input, shape index: {}]   ;;  %s396_s2 = inlined_call_operand.vmem [shape: f32[2,64,128], index: 2, kind: input, shape index: {}]   ;;  %s397_s3 = inlined_call_operand.vmem [shape: f32[2,64,128], index: 3, kind: output, shape index: {}]  }
   0x1 LB: > { %s312_s13 = sadd.s32 4294967295, %s341_s12   ;;  %p316_p0 = scmp.ge.s32.totalorder %s341_s12, 1  ;;  %s341_s12 = sphi %s363_s12, %s13_s12  }
   0x2   : > { %p146_p1 = scmp.lt.s32.totalorder %s341_s12, 3 }
   0x4   : > { %p147_p2 = pnand %p316_p0, %p146_p1 }
   0x5   : > { %p174_p3 = scmp.lt.s32.totalorder (!%p147_p2), %s312_s13, 1 }
   0x6   : > { %150 = sbr.rel (%p147_p2) target bundleno = 27 (0x1b), region = 32 }
   0xb   : > { %v213_v0 = vlaneseq  ;;  %s399_s13 = smov (!%p174_p3, %s312_s13), 1  ;;  %v322_v2 = vld [vmem:[%s394_s0] ss:$0 sm:$0xff] }
   0xc   : > { %s317_s14 = sshll.u32 %s399_s13, 1  ;;  %s325_s15 = sshll.u32 %s399_s13, 6 }
   0xd   : > { %v214_v1 = vshrl.u32 %v213_v0, 7  ;;  %s177_s20 = scalar_lea.vmem %s395_s1, %s317_s14  ;;  %s182_s23 = scalar_lea.vmem %s396_s2, %s325_s15 }
   0xe   : > { %v189_v5 = vld [vmem:[%s177_s20] sm:$0x3]  ;;  %v191_v7 = vld [vmem:[%s182_s23 + $0x8] sm:$0xff]  ;;  %v192_v11 = vld [vmem:[%s182_s23 + $0x10] sm:$0xff]  ;;  %s187_s26 = scalar_lea.vmem %s397_s3, %s325_s15 }
   0xf   : > { %v227_v3 = vsub.s32 1, %v214_v1  ;;  %v215_v4 = vsub.s32 0, %v214_v1  ;;  %v190_v6 = vld [vmem:[%s182_s23] sm:$0xff]  ;;  %v212_v9 = vadd.f32 1.0, %v189_v5  ;;  %v205_v10 = vadd.f32 %v322_v2, %v191_v7  ;;  %v193_v12 = vld [vmem:[%s182_s23 + $0x18] sm:$0xff]  ;;  %v195_v18 = vld [vmem:[%s182_s23 + $0x28] sm:$0xff] }
  0x10   : > { %v204_v8 = vadd.f32 %v322_v2, %v190_v6  ;;  %v194_v13 = vld [vmem:[%s182_s23 + $0x20] sm:$0xff]  ;;  %v206_v15 = vadd.f32 %v322_v2, %v192_v11  ;;  %v207_v16 = vadd.f32 %v322_v2, %v193_v12  ;;  %v196_v19 = vld [vmem:[%s182_s23 + $0x30] sm:$0xff]  ;;  %v197_v20 = vld [vmem:[%s182_s23 + $0x38] sm:$0xff]  ;;  %v209_v22 = vadd.f32 %v322_v2, %v195_v18 }
  0x11   : > { %v228_v14 = vrot.slane %v189_v5, %v227_v3  ;;  %v208_v17 = vadd.f32 %v322_v2, %v194_v13  ;;  %v216_v21 = vrot.slane %v212_v9, %v215_v4  ;;  %v210_v23 = vadd.f32 %v322_v2, %v196_v19 }
  0x12   : > { %v211_v24 = vadd.f32 %v322_v2, %v197_v20 }
  0x13   : > { %v217_v25 = vmul.f32 %v216_v21, %v204_v8  ;;  %v218_v26 = vmul.f32 %v216_v21, %v205_v10  ;;  %v219_v27 = vmul.f32 %v216_v21, %v206_v15  ;;  %v220_v28 = vmul.f32 %v216_v21, %v207_v16 }
  0x14   : > { %v221_v29 = vmul.f32 %v216_v21, %v208_v17  ;;  %v222_v30 = vmul.f32 %v216_v21, %v209_v22  ;;  %v223_v31 = vmul.f32 %v216_v21, %v210_v23  ;;  %v224_v32 = vmul.f32 %v216_v21, %v211_v24 }
  0x15   : > { %v229_v33 = vadd.f32 %v228_v14, %v217_v25  ;;  %v230_v34 = vadd.f32 %v228_v14, %v218_v26  ;;  %v231_v35 = vadd.f32 %v228_v14, %v219_v27  ;;  %v232_v36 = vadd.f32 %v228_v14, %v220_v28 }
  0x16   : > { %v233_v37 = vadd.f32 %v228_v14, %v221_v29  ;;  %v234_v38 = vadd.f32 %v228_v14, %v222_v30  ;;  %v235_v39 = vadd.f32 %v228_v14, %v223_v31  ;;  %v236_v40 = vadd.f32 %v228_v14, %v224_v32 }
  0x17   : > { %237 = vst [vmem:[%s187_s26] sm:$0xff] %v229_v33  ;;  %238 = vst [vmem:[%s187_s26 + $0x8] sm:$0xff] %v230_v34 }
  0x18   : > { %239 = vst [vmem:[%s187_s26 + $0x10] sm:$0xff] %v231_v35  ;;  %240 = vst [vmem:[%s187_s26 + $0x18] sm:$0xff] %v232_v36 }
  0x19   : > { %241 = vst [vmem:[%s187_s26 + $0x20] sm:$0xff] %v233_v37  ;;  %242 = vst [vmem:[%s187_s26 + $0x28] sm:$0xff] %v234_v38 }
  0x1a   : > { %243 = vst [vmem:[%s187_s26 + $0x30] sm:$0xff] %v235_v39  ;;  %244 = vst [vmem:[%s187_s26 + $0x38] sm:$0xff] %v236_v40 }
  0x1b PF: > { %s13_s12 = sadd.s32 1, %s341_s12  }
  0x1c   : > { %p10_p4 = scmp.ge.s32.totalorder %s13_s12, 4  }
  0x1e   :  { %12 = sbr.rel (!%p10_p4) target bundleno = 1 (0x1), region = 65 }

// kernel: _lambda_.3
= control target key start
LH: loop header
LB: loop body
LE: loop exit
PB: predicated region body
PF: predicated region fallthrough
CT: control target
= control target key end

     0   :  { %s258_s9 = smov 0   ;;  %s278_s0 = inlined_call_operand.vmem [shape: f32[1,1,128], index: 0, kind: input, shape index: {}]   ;;  %s279_s1 = inlined_call_operand.vmem [shape: f32[2,2,128], index: 1, kind: input, shape index: {}]   ;;  %s280_s2 = inlined_call_operand.vmem [shape: f32[2,64,128], index: 2, kind: output, shape index: {}]  }
   0x1 LB: > { %s216_s10 = sadd.s32 4294967295, %s241_s9   ;;  %p220_p0 = scmp.ge.s32.totalorder %s241_s9, 1  ;;  %s241_s9 = sphi %s258_s9, %s12_s9  }
   0x2   : > { %p111_p1 = scmp.lt.s32.totalorder %s241_s9, 3 }
   0x4   : > { %p112_p2 = pnand %p220_p0, %p111_p1 }
   0x5   : > { %p132_p3 = scmp.lt.s32.totalorder (!%p112_p2), %s216_s10, 1 }
   0x6   : > { %115 = sbr.rel (%p112_p2) target bundleno = 27 (0x1b), region = 28 }
   0xb   : > { %v149_v0 = vlaneseq  ;;  %s282_s10 = smov (!%p132_p3, %s216_s10), 1  ;;  %v141_v2 = vld [vmem:[%s278_s0] sm:$0x1] }
   0xc   : > { %s221_s11 = sshll.u32 %s282_s10, 1  ;;  %s226_s17 = sshll.u32 %s282_s10, 6 }
   0xd   : > { %s135_s14 = scalar_lea.vmem %s279_s1, %s221_s11  ;;  %v150_v1 = vshrl.u32 %v149_v0, 7  ;;  %s140_s20 = scalar_lea.vmem %s280_s2, %s226_s17 }
   0xe   : > { %v142_v3 = vld [vmem:[%s135_s14] sm:$0x3] }
   0xf   : > { %v143_v4 = vadd.f32 1.0, %v142_v3  ;;  %v146_v5 = vrot.slane %v142_v3, 1  ;;  %v151_v7 = vsub.s32 0, %v150_v1 }
  0x11   : > { %v144_v6 = vmul.f32 %v143_v4, %v141_v2 }
  0x13   : > { %v148_v8 = vadd.f32 %v146_v5, %v144_v6 }
  0x15   : > { %v152_v9 = vrot.slane %v148_v8, %v151_v7 }
  0x17   : > { %153 = vst [vmem:[%s140_s20] sm:$0xff] %v152_v9  ;;  %154 = vst [vmem:[%s140_s20 + $0x8] sm:$0xff] %v152_v9 }
  0x18   : > { %155 = vst [vmem:[%s140_s20 + $0x10] sm:$0xff] %v152_v9  ;;  %156 = vst [vmem:[%s140_s20 + $0x18] sm:$0xff] %v152_v9 }
  0x19   : > { %157 = vst [vmem:[%s140_s20 + $0x20] sm:$0xff] %v152_v9  ;;  %158 = vst [vmem:[%s140_s20 + $0x28] sm:$0xff] %v152_v9 }
  0x1a   : > { %159 = vst [vmem:[%s140_s20 + $0x30] sm:$0xff] %v152_v9  ;;  %160 = vst [vmem:[%s140_s20 + $0x38] sm:$0xff] %v152_v9 }
  0x1b PF: > { %s12_s9 = sadd.s32 1, %s241_s9  }
  0x1c   : > { %p9_p4 = scmp.ge.s32.totalorder %s12_s9, 4  }
  0x1e   :  { %11 = sbr.rel (!%p9_p4) target bundleno = 1 (0x1), region = 58 }

// kernel: _lambda_.5
= control target key start
LH: loop header
LB: loop body
LE: loop exit
PB: predicated region body
PF: predicated region fallthrough
CT: control target
= control target key end

     0   :  { %10 = vsyncpa [#allocation3], 0  ;;  %s1085_s0 = inlined_call_operand.vmem [shape: f32[2,64,128], index: 0, kind: input, shape index: {}]   ;;  %s1086_s1 = inlined_call_operand.vmem [shape: bf16[128,128], index: 1, kind: input, shape index: {}]   ;;  %s1087_s2 = inlined_call_operand.vmem [shape: f32[2,128], index: 2, kind: input, shape index: {}]   ;;  %s1088_s3 = inlined_call_operand.vmem [shape: bf16[128,128], index: 3, kind: input, shape index: {}]   ;;  %s1089_s4 = inlined_call_operand.vmem [shape: f32[1,128], index: 4, kind: input, shape index: {}]   ;;  %s1090_s5 = inlined_call_operand.hbm [shape: f32[2,1,128], index: 5, kind: output, shape index: {}]  }
   0x1   :  { %12 = vsyncpa [#allocation3 + $0x1], 0  ;;  %s918_s18 = smov 0   ;;  %s920_s19 = smov 0  }
   0x2   :  { %s922_s20 = smov 0   ;;  %s924_s21 = smov 0  }
   0x3 LB: > { %s939_s22 = sadd.s32 4294967295, %s883_s21   ;;  %s635_s23 = sadd.s32 4294967294, %s883_s21   ;;  %s883_s21 = sphi %s924_s21, %s1096_s21   ;;  %s879_s20 = sphi %s922_s20, %s1095_s20   ;;  %s875_s19 = sphi %s920_s19, %s1094_s19   ;;  %s871_s18 = sphi %s918_s18, %s1093_s18  }
   0x4   : > { %s943_s24 = sadd.s32 1, %s883_s21   ;;  %s135_s25 = sadd.s32 1, %s879_s20 }
   0x5   : > { %s132_s26 = ssub.s32 %s883_s21, %s943_s24  ;;  %p145_p0 = scmp.ne.s32.totalorder %s879_s20, %s875_s19 }
   0x6   : > { %p133_p1 = scmp.eq.s32.totalorder %s132_s26, 0  ;;  %p146_p2 = scmp.eq.s32.totalorder %s939_s22, 1 }
   0x7   : > { %p151_p3 = scmp.ne.s32.totalorder %s875_s19, %s871_s18  ;;  %p152_p4 = scmp.eq.s32.totalorder %s635_s23, 1 }
   0x8   : > { %s954_s27 = scalar_select %p133_p1, %s879_s20, %s135_s25  }
   0x9   : > { %p956_p5 = por %p146_p2, %p145_p0  ;;  %p960_p6 = por %p152_p4, %p151_p3 }
   0xa   : > { %p638_p7 = scmp.ge.s32.totalorder %s883_s21, 1  ;;  %p190_p8 = scmp.lt.s32.totalorder %s883_s21, 3 }
   0xc   : > { %p191_p9 = pnand %p638_p7, %p190_p8 }
   0xd   : > { %p217_p10 = scmp.lt.s32.totalorder (!%p191_p9), %s939_s22, 1  ;;  %s665_s16 = sshll.u32 (!%p191_p9), %s939_s22, 4 }
   0xe   : > { %194 = sbr.rel (%p191_p9) target bundleno = 528 (0x210), region = 40  ;;  %s1044_s26 = scalar_lea.hbm (!%p191_p9), %s1090_s5, %s665_s16 }
  0x13   : > { %v775_v0 = vld [vmem:[%s1086_s1 + $0x38] sm:$0xff]   ;;  %v776_v1 = vld [vmem:[%s1086_s1 + $0x30] sm:$0xff]   ;;  %s218_s9 = scalar_select %p217_p10, %s939_s22, 1  ;;  %v777_v2 = vld [vmem:[%s1086_s1 + $0x28] sm:$0xff]   ;;  %v885_v21 = vmov 0.0   ;;  %vm886_vm0 = vmmov 0   ;;  %v365_v29 = vlaneseq }
  0x14   : > { %690 = vmatprep.subr.bf16.mxu0 %v775_v0  ;;  %v778_v3 = vld [vmem:[%s1086_s1 + $0x20] sm:$0xff]   ;;  %v779_v7 = vld [vmem:[%s1086_s1 + $0x18] sm:$0xff]   ;;  %v780_v8 = vld [vmem:[%s1086_s1 + $0x10] sm:$0xff]   ;;  %714 = vmatprep.subr.bf16.mxu1 %v885_v21  ;;  %s887_s22 = smov [#allocation2]  }
  0x15   : > { %691 = vmatpush3.bf16.msra.mxu0 %v775_v0  ;;  %s668_s12 = sshll.u32 %s218_s9, 6  ;;  %v781_v9 = vld [vmem:[%s1086_s1 + $0x8] sm:$0xff]   ;;  %v782_v10 = vld [vmem:[%s1086_s1] sm:$0xff]   ;;  %v783_v20 = vld [vmem:[%s1088_s3 + $0x38] sm:$0xff]   ;;  %730 = vmatprep.mubr.msk.bf16.mxu1 %vm886_vm0, %v885_v21  ;;  %v366_v30 = vshrl.u32 %v365_v29, 7  ;;  %s827_s7 = sshll.u32 %s887_s22, 4  ;;  %s828_s7 = int_to_ptr.vmem [resolvable:$false] %s827_s7 }
  0x16   : > { %692 = vmatprep.subr.bf16.mxu0 %v776_v1  ;;  %s980_s15 = scalar_lea.vmem %s1085_s0, %s668_s12  ;;  %715 = vmatpush3.bf16.msra.mxu1 %v783_v20  ;;  %v784_v22 = vld [vmem:[%s1088_s3 + $0x30] sm:$0xff]   ;;  %v785_v23 = vld [vmem:[%s1088_s3 + $0x28] sm:$0xff]   ;;  %v786_v24 = vld [vmem:[%s1088_s3 + $0x20] sm:$0xff]   ;;  %s215_s12 = sand.u32 1, %s875_s19  }
  0x17   : > { %v223_v4 = vld [vmem:[%s980_s15] sm:$0xff]  ;;  %v224_v5 = vld [vmem:[%s980_s15 + $0x8] sm:$0xff]  ;;  %v225_v11 = vld [vmem:[%s980_s15 + $0x10] sm:$0xff]  ;;  %716 = vmatprep.subr.bf16.mxu1 %v885_v21  ;;  %v367_v31 = vsub.s32 0, %v366_v30  ;;  %v379_v33 = vsub.s32 1, %v366_v30  ;;  %s568_s30 = scalar_lea.sflag [#allocation3], %s215_s12 }
  0x18   : > { %v231_v6 = vpack.c.bf16 %v224_v5, %v223_v4  ;;  %v226_v12 = vld [vmem:[%s980_s15 + $0x18] sm:$0xff]  ;;  %v227_v13 = vld [vmem:[%s980_s15 + $0x20] sm:$0xff]  ;;  %v228_v14 = vld [vmem:[%s980_s15 + $0x28] sm:$0xff]  ;;  %s829_s8 = scalar_lea.vmem %s828_s7, 32 }
  0x19   : > { %693 = vmatpush3.bf16.msra.mxu0 %v776_v1  ;;  %v232_v15 = vpack.c.bf16 %v226_v12, %v225_v11  ;;  %v233_v16 = vpack.c.bf16 %v228_v14, %v227_v13  ;;  %v229_v17 = vld [vmem:[%s980_s15 + $0x30] sm:$0xff]  ;;  %v230_v18 = vld [vmem:[%s980_s15 + $0x38] sm:$0xff]  ;;  %v789_v27 = vld [vmem:[%s1088_s3 + $0x8] sm:$0xff]   ;;  %s216_s15 = scalar_lea.vmem [#allocation2], %s215_s12 }
  0x1a   : > { %694 = vmatprep.subr.bf16.mxu0 %v777_v2  ;;  %706 = vmatprep.mubr.bf16.mxu0 %v231_v6  ;;  %v234_v19 = vpack.c.bf16 %v230_v18, %v229_v17  ;;  %v787_v25 = vld [vmem:[%s1088_s3 + $0x18] sm:$0xff]   ;;  %v788_v26 = vld [vmem:[%s1088_s3 + $0x10] sm:$0xff]   ;;  %v790_v28 = vld [vmem:[%s1088_s3] sm:$0xff]   ;;  %s580_s17 = sshll.u32 %s216_s15, 4  ;;  %s1046_s17 = int_to_ptr.vmem [resolvable:$true] %s580_s17 }
  0x1b   : > { %717 = vmatpush3.bf16.msra.mxu1 %v784_v22  ;;  %v364_v32 = vld [vmem:[%s1087_s2] sm:$0x3]  ;;  %s823_s6 = scalar_lea.vmem %s1046_s17, 16  ;;  %p830_p0 = scmp.lt.s32.totalorder %s1046_s17, %s828_s7 }
  0x1c   : > { %718 = vmatprep.subr.bf16.mxu1 %v885_v21  ;;  %v368_v34 = vrot.slane %v364_v32, %v367_v31  ;;  %v380_v35 = vrot.slane %v364_v32, %v379_v33  ;;  %p824_p11 = scmp.ne.s32.totalorder %s1046_s17, %s823_s6  ;;  %p831_p1 = scmp.lt.s32.totalorder %s829_s8, %s823_s6 }
  0x1d   : > { %695 = vmatpush3.bf16.msra.mxu0 %v777_v2 }
  0x1e   : > { %696 = vmatprep.subr.bf16.mxu0 %v778_v3  ;;  %p825_p12 = pnand %p824_p11, %p956_p5  ;;  %p832_p2 = por %p831_p1, %p830_p0 }
  0x1f   : > { %719 = vmatpush3.bf16.msra.mxu1 %v785_v23 }
  0x20   : > { %720 = vmatprep.subr.bf16.mxu1 %v885_v21  ;;  %p826_p13 = pneg %p825_p12 }
  0x21   : > { %697 = vmatpush3.bf16.msra.mxu0 %v778_v3 }
  0x22   : > { %698 = vmatprep.subr.bf16.mxu0 %v779_v7  ;;  %p833_p3 = pnand %p832_p2, %p826_p13 }
  0x23   : > { %721 = vmatpush3.bf16.msra.mxu1 %v786_v24 }
  0x24   : > { %722 = vmatprep.subr.bf16.mxu1 %v885_v21 }
  0x25   : > { %699 = vmatpush3.bf16.msra.mxu0 %v779_v7 }
  0x26   : > { %700 = vmatprep.subr.bf16.mxu0 %v780_v8 }
  0x27   : > { %723 = vmatpush3.bf16.msra.mxu1 %v787_v25 }
  0x28   : > { %724 = vmatprep.subr.bf16.mxu1 %v885_v21 }
  0x29   : > { %701 = vmatpush3.bf16.msra.mxu0 %v780_v8 }
  0x2a   : > { %702 = vmatprep.subr.bf16.mxu0 %v781_v9 }
  0x2b   : > { %725 = vmatpush3.bf16.msra.mxu1 %v788_v26 }
  0x2c   : > { %726 = vmatprep.subr.bf16.mxu1 %v885_v21 }
  0x2d   : > { %703 = vmatpush3.bf16.msra.mxu0 %v781_v9 }
  0x2e   : > { %704 = vmatprep.subr.bf16.mxu0 %v782_v10 }
  0x2f   : > { %727 = vmatpush3.bf16.msra.mxu1 %v789_v27 }
  0x30   : > { %728 = vmatprep.subr.bf16.mxu1 %v885_v21 }
  0x31   : > { %705 = vmatpush3.bf16.msra.mxu0 %v782_v10 }
  0x33   : > { %729 = vmatpush3.bf16.msra.mxu1 %v790_v28 }
  0x34   : > { %707 = vmatmul.mubr.bf16.vlgmr.msra.gmra.mxu0 %v232_v15 }
  0x35   : > { %710 = vmatprep.mubr.bf16.mxu0 %v233_v16 }
  0x3c   : > { %711 = vmatmul.mubr.bf16.gmra.mxu0 %v234_v19 }
  0xf4   : > { %v708_v36 = vpop.f32.mrf.mxu0 }
  0xf5   : > { %v371_v37 = vmul.f32 %v708_v36, %v368_v34 }
  0xf6   : > { %v333_v38 = vpop.f32.mrf.mxu0 }
  0xf7   : > { %v1032_v39 = vadd.f32 %v380_v35, %v371_v37  ;;  %v369_v40 = vmul.f32 %v368_v34, %v333_v38 }
  0xf8   : > { %v709_v41 = vpop.f32.mrf.mxu0 }
  0xf9   : > { %v651_v42 = vmul.f32 -1.442695, %v1032_v39  ;;  %v381_v43 = vadd.f32 %v380_v35, %v369_v40  ;;  %v372_v44 = vmul.f32 %v709_v41, %v368_v34 }
  0xfa   : > { %v336_v45 = vpop.f32.mrf.mxu0 }
  0xfb   : > { %v649_v46 = vmul.f32 -1.442695, %v381_v43  ;;  %v384_v47 = vadd.f32 %v380_v35, %v372_v44  ;;  %v370_v48 = vmul.f32 %v368_v34, %v336_v45  ;;  %791 = vpow2.f32 %v651_v42 }
  0xfc   : > { %v712_v49 = vpop.f32.mrf.mxu0 }
  0xfd   : > { %793 = vpow2.f32 %v649_v46  ;;  %v652_v50 = vmul.f32 -1.442695, %v384_v47  ;;  %v382_v51 = vadd.f32 %v380_v35, %v370_v48  ;;  %v375_v52 = vmul.f32 %v712_v49, %v368_v34 }
  0xfe   : > { %v349_v53 = vpop.f32.mrf.mxu0 }
  0xff   : > { %795 = vpow2.f32 %v652_v50  ;;  %v650_v54 = vmul.f32 -1.442695, %v382_v51  ;;  %v387_v55 = vadd.f32 %v380_v35, %v375_v52  ;;  %v373_v56 = vmul.f32 %v368_v34, %v349_v53 }
 0x100   : > { %v713_v57 = vpop.f32.mrf.mxu0 }
 0x101   : > { %797 = vpow2.f32 %v650_v54  ;;  %v655_v58 = vmul.f32 -1.442695, %v387_v55  ;;  %v385_v59 = vadd.f32 %v380_v35, %v373_v56  ;;  %v376_v60 = vmul.f32 %v713_v57, %v368_v34 }
 0x102   : > { %v352_v61 = vpop.f32.mrf.mxu0 }
 0x103   : > { %v653_v62 = vmul.f32 -1.442695, %v385_v59  ;;  %v388_v63 = vadd.f32 %v380_v35, %v376_v60  ;;  %v374_v0 = vmul.f32 %v368_v34, %v352_v61  ;;  %799 = vpow2.f32 %v655_v58 }
 0x105   : > { %801 = vpow2.f32 %v653_v62  ;;  %v656_v1 = vmul.f32 -1.442695, %v388_v63  ;;  %v386_v2 = vadd.f32 %v380_v35, %v374_v0 }
 0x107   : > { %803 = vpow2.f32 %v656_v1  ;;  %v654_v3 = vmul.f32 -1.442695, %v386_v2 }
 0x108   : > { %v792_v4 = vpop.eup %791 }
 0x109   : > { %805 = vpow2.f32 %v654_v3  ;;  %v415_v8 = vadd.f32 1.0, %v792_v4 }
 0x10a   : > { %v794_v5 = vpop.eup %793 }
 0x10b   : > { %v413_v6 = vadd.f32 1.0, %v794_v5 }
 0x10c   : > { %v796_v7 = vpop.eup %795 }
 0x10d   : > { %807 = vrcp.f32 %v413_v6  ;;  %v416_v10 = vadd.f32 1.0, %v796_v7 }
 0x10e   : > { %v798_v9 = vpop.eup %797  ;;  %809 = vrcp.f32 %v415_v8 }
 0x10f   : > { %v414_v11 = vadd.f32 1.0, %v798_v9 }
 0x110   : > { %v800_v12 = vpop.eup %799 }
 0x111   : > { %811 = vrcp.f32 %v414_v11  ;;  %v419_v16 = vadd.f32 1.0, %v800_v12 }
 0x112   : > { %v802_v13 = vpop.eup %801  ;;  %813 = vrcp.f32 %v416_v10 }
 0x113   : > { %v417_v14 = vadd.f32 1.0, %v802_v13 }
 0x114   : > { %v804_v15 = vpop.eup %803 }
 0x115   : > { %815 = vrcp.f32 %v417_v14  ;;  %v420_v18 = vadd.f32 1.0, %v804_v15 }
 0x116   : > { %v806_v17 = vpop.eup %805  ;;  %817 = vrcp.f32 %v419_v16 }
 0x117   : > { %v418_v19 = vadd.f32 1.0, %v806_v17 }
 0x119   : > { %819 = vrcp.f32 %v418_v19 }
 0x11a   : > { %821 = vrcp.f32 %v420_v18  ;;  %v808_v20 = vpop.eup %807 }
 0x11b   : > { %v810_v21 = vpop.eup %809  ;;  %v437_v23 = vmul.f32 %v808_v20, %v381_v43 }
 0x11c   : > { %v439_v26 = vmul.f32 %v810_v21, %v1032_v39 }
 0x11e   : > { %v812_v22 = vpop.eup %811 }
 0x11f   : > { %v438_v24 = vmul.f32 %v812_v22, %v382_v51  ;;  %v814_v25 = vpop.eup %813  ;;  %v477_v51 = vld [vmem:[%s1089_s4] sm:$0x1] }
 0x120   : > { %v440_v29 = vmul.f32 %v814_v25, %v384_v47 }
 0x121   : > { %v445_v27 = vadd.f32 %v438_v24, %v437_v23 }
 0x122   : > { %v816_v28 = vpop.eup %815 }
 0x123   : > { %v446_v30 = vadd.f32 %v445_v27, %v439_v26  ;;  %v818_v31 = vpop.eup %817  ;;  %v441_v32 = vmul.f32 %v816_v28, %v385_v59 }
 0x124   : > { %v443_v38 = vmul.f32 %v818_v31, %v387_v55 }
 0x125   : > { %v447_v33 = vadd.f32 %v446_v30, %v440_v29 }
 0x126   : > { %v820_v34 = vpop.eup %819 }
 0x127   : > { %v448_v35 = vadd.f32 %v447_v33, %v441_v32  ;;  %v442_v36 = vmul.f32 %v820_v34, %v386_v2  ;;  %v822_v37 = vpop.eup %821 }
 0x128   : > { %v444_v41 = vmul.f32 %v822_v37, %v388_v63 }
 0x129   : > { %v449_v40 = vadd.f32 %v448_v35, %v442_v36 }
 0x12b   : > { %v450_v42 = vadd.f32 %v449_v40, %v443_v38 }
 0x12d   : > { %v451_v43 = vadd.f32 %v450_v42, %v444_v41 }
 0x12f   : > { %v452_v44 = vrot.slane %v451_v43, 4 }
 0x131   : > { %v453_v39 = vadd.f32 %v452_v44, %v451_v43 }
 0x133   : > { %v454_v45 = vrot.slane %v453_v39, 2 }
 0x135   : > { %v455_v46 = vadd.f32 %v454_v45, %v453_v39 }
 0x137   : > { %v456_v47 = vrot.slane %v455_v46, 1 }
 0x139   : > { %v457_v48 = vadd.f32 %v456_v47, %v455_v46 }
 0x13b   : > { %v459_v49 = vmul.f32 0.015625, %v457_v48 }
 0x13d   : > { %v460_v50 = vpack.c.bf16 %v459_v49, %v459_v49 }
 0x13f   : > { %731 = vmatmul.mubr.bf16.vlgmr.msra.gmra.mxu1 %v460_v50 }
 0x1ff   : > { %v560_v52 = vpop.f32.mrf.mxu1 }
 0x200   : > { %v561_v53 = vadd.f32 %v560_v52, %v477_v51 }
 0x201   : > { %v732_v54 = vpop.f32.mrf.mxu1 }
 0x202   : > { %566 = vst [vmem:[%s216_s15] sm:$0x1] %v561_v53 }
 0x203   : > { %v563_v55 = vpop.f32.mrf.mxu1 }
 0x204   : > { %836 = shalt.err (!%p833_p3)
}
 0x205   : > { %s837_s9 = scalar_lea.hbm %s1044_s26, 16  ;;  %s841_s12 = scalar_lea.hbm %s1090_s5, 32 }
 0x206   : > { %p838_p4 = scmp.ne.s32.totalorder %s1044_s26, %s837_s9  ;;  %p842_p9 = scmp.lt.s32.totalorder %s1044_s26, %s1090_s5 }
 0x207   : > { %p843_p10 = scmp.lt.s32.totalorder %s841_s12, %s837_s9 }
 0x208   : > { %p839_p7 = pnand %p838_p4, %p956_p5 }
 0x209   : > { %p844_p11 = por %p843_p10, %p842_p9 }
 0x20a   : > { %p840_p8 = pneg %p839_p7 }
 0x20c   : > { %p845_p12 = pnand %p844_p11, %p840_p8 }
 0x20e   : > { %848 = shalt.err (!%p845_p12)
}
 0x20f   : > { %734 = dma.vmem_to_hbm [thread:$0]  (%p956_p5), %s1046_s17, 16, %s1044_s26, %s568_s30   ;;  %v733_v56 = vpop.f32.mrf.mxu1 }
 0x210 PF: > { %p740_p13 = scmp.ge.s32.totalorder %s883_s21, 2  ;;  %s592_s16 = sand.u32 1, %s871_s18  }
 0x211   : > { %s593_s15 = scalar_lea.sflag [#allocation3], %s592_s16 }
 0x212   : > { %p737_p0 = pnand %p740_p13, %p960_p6 }
 0x214   : > { %p738_p1 = pneg %p737_p0 }
 0x216   : > { %866 = dma.done.wait (%p738_p1), %s593_s15, 16  }
 0x217   : > { %868 = vsyncadd (%p738_p1), %s593_s15, 4294967280  ;;  %p15_p2 = scmp.ge.s32.totalorder %s943_s24, 4   ;;  %s1093_s18 = smov %s875_s19 }
 0x218   : > { %s1094_s19 = smov %s879_s20  ;;  %s1095_s20 = smov %s954_s27 }
 0x219   : > { %s1096_s21 = smov %s943_s24  ;;  %17 = sbr.rel (!%p15_p2) target bundleno = 3 (0x3), region = 75 }
 0x21e   :  { %597 = vsyncpa [#allocation3], 1 }
 0x21f   :  { %599 = vsyncpa [#allocation3 + $0x1], 1 }

</bundles_post_ra>
